<compile_context>
chip_gen: v7x
topology: tpu7x:2x2x1
jax: 0.10.0
libtpu: 0.0.40
codegen_flags: <defaults>
</compile_context>

<pallas_src>
import numpy as np
import jax
import jax.numpy as jnp
from jax import lax
from jax.experimental import pallas as pl
from jax.experimental.pallas import tpu as pltpu

LEAKY_SLOPE = 0.2
BN_EPS = 1e-5


def _ceil8(n):
    return ((n + 7) // 8) * 8


def _vmem_limit_bytes():
    """~75% of physical VMEM (v5e/v6e: 128 MiB, v7x: 64 MiB)."""
    try:
        cap = int(pltpu.get_tpu_info().vmem_capacity_bytes)
    except Exception:
        cap = 64 * 1024 * 1024
    return (cap * 3) // 4


# ----------------------------- in-kernel helpers -----------------------------

def _modulate(xn, oh_mm, gb_ref, n_leaky, mm_dtype):
    """Class-affine modulation gamma[label]*xn + beta[label], then LeakyReLU^n."""
    gamma = jnp.dot(gb_ref[0].astype(mm_dtype), oh_mm,
                    preferred_element_type=jnp.float32)
    beta = jnp.dot(gb_ref[1].astype(mm_dtype), oh_mm,
                   preferred_element_type=jnp.float32)
    a = gamma * xn + beta
    if n_leaky:
        slope = jnp.float32(LEAKY_SLOPE ** n_leaky)      # LeakyReLU applied n times
        a = jnp.where(a >= 0.0, a, slope * a)
    return a


def _conv_im2col(xm, w_flat, mask_ref, k, w_img, hw, mm_dtype):
    """k x k 'SAME' conv of xm [C, HW] (H*W flattened, lane-dense) as ONE matmul.

    Builds the [k*k*C, HW] im2col operand in VMEM from a zero-padded flat copy
    (vertical out-of-image taps read the pad) plus per-offset column masks
    (horizontal wrap), then contracts with w_flat [Cout, k*k*C] on the MXU.
    """
    if k == 1:
        return jnp.dot(w_flat.astype(mm_dtype), xm.astype(mm_dtype),
                       preferred_element_type=jnp.float32)
    c = xm.shape[0]
    pad = k // 2
    base = w_img * pad + pad
    zpad = jnp.zeros((c, base), xm.dtype)
    xz = jnp.concatenate([zpad, xm, zpad], axis=1)        # [C, HW + 2*base]
    taps = []
    for dy in range(-pad, pad + 1):
        for dx in range(-pad, pad + 1):
            off = base + dy * w_img + dx
            sh = xz[:, off:off + hw]                      # xm[:, i + dy*W + dx], 0 for OOB rows
            if dx != 0:
                sh = sh * mask_ref[dx + pad]              # zero horizontal wrap (precomputed)
            taps.append(sh)
    col = jnp.concatenate(taps, axis=0)                   # [k*k*C, HW]; C % 8 == 0 -> aligned
    return jnp.dot(w_flat.astype(mm_dtype), col.astype(mm_dtype),
                   preferred_element_type=jnp.float32)


# --------------------------------- kernels -----------------------------------

def _stats_kernel(x_ref, o_ref):
    """Per-image, per-channel (mean, sum of squared deviations); combined in JAX."""
    x = x_ref[0]                                          # [C, HW]
    m = jnp.mean(x, axis=1, keepdims=True)
    d = x - m
    o_ref[0] = jnp.concatenate([m, jnp.sum(d * d, axis=1, keepdims=True)], axis=1)


def _make_stage1_kernel(k, w_img, hw, has_res, mm_dtype):
    """BN-apply + argmax labels + mod_0 + LeakyReLU^2 + conv_0 (+bias), fused with
    the 1x1 resnet branch (mod_res + conv_res); also emits per-image d0 stats."""

    def kernel(x_ref, seg_ref, st_ref, mask_ref, gb0_ref, w0_ref, b0_ref, *rest):
        if has_res:
            gbr_ref, wr_ref, lab_ref, d0_ref, d0st_ref, xres_ref = rest
        else:
            lab_ref, d0_ref, d0st_ref = rest

        x = x_ref[0]                                      # [Cp_in, HW]
        st = st_ref[...]                                  # [Cp_in, 2] (mean, inv_std)
        xn = (x - st[:, 0:1]) * st[:, 1:2]                # BatchNorm apply (batch stats)

        seg = seg_ref[0]                                  # [L, HW]
        num_l = seg.shape[0]
        li = lax.broadcasted_iota(jnp.int32, (num_l, hw), 0)
        maxv = jnp.max(seg, axis=0, keepdims=True)
        labels = jnp.min(jnp.where(seg == maxv, li, jnp.int32(num_l)),
                         axis=0, keepdims=True)           # first argmax, [1, HW] int32
        lab_ref[0] = labels
        oh_mm = (li == labels).astype(mm_dtype)           # one-hot [L, HW]

        a0 = _modulate(xn, oh_mm, gb0_ref, 2, mm_dtype)   # mod_0 + 2x LeakyReLU
        d0 = _conv_im2col(a0, w0_ref[...], mask_ref, k, w_img, hw, mm_dtype) + b0_ref[...]
        d0_ref[0] = d0
        m = jnp.mean(d0, axis=1, keepdims=True)           # per-image stats for BN #2
        dev = d0 - m
        d0st_ref[0] = jnp.concatenate([m, jnp.sum(dev * dev, axis=1, keepdims=True)], axis=1)

        if has_res:
            ar = _modulate(xn, oh_mm, gbr_ref, 0, mm_dtype)   # mod_res (no activation)
            xres_ref[0] = _conv_im2col(ar, wr_ref[...], mask_ref, 1, w_img, hw, mm_dtype)

    return kernel


def _make_stage2_kernel(k, w_img, hw, mm_dtype):
    """BN-apply + mod_1 + LeakyReLU^2 + conv_1 (+bias) + residual add."""

    def kernel(d_ref, lab_ref, st_ref, mask_ref, gb1_ref, w1_ref, b1_ref, res_ref, o_ref):
        x = d_ref[0]
        st = st_ref[...]
        xn = (x - st[:, 0:1]) * st[:, 1:2]
        num_l = gb1_ref.shape[2]
        li = lax.broadcasted_iota(jnp.int32, (num_l, hw), 0)
        oh_mm = (li == lab_ref[0]).astype(mm_dtype)       # rebuild one-hot from labels
        a1 = _modulate(xn, oh_mm, gb1_ref, 2, mm_dtype)
        out = _conv_im2col(a1, w1_ref[...], mask_ref, k, w_img, hw, mm_dtype) + b1_ref[...]
        o_ref[0] = out + res_ref[0]

    return kernel


# ------------------------------ pallas wrappers -------------------------------

def _per_image_stats(x_p, vmem_limit):
    B, C, HW = x_p.shape
    return pl.pallas_call(
        _stats_kernel,
        out_shape=jax.ShapeDtypeStruct((B, C, 2), jnp.float32),
        grid=(B,),
        in_specs=[pl.BlockSpec((1, C, HW), lambda b: (b, 0, 0))],
        out_specs=pl.BlockSpec((1, C, 2), lambda b: (b, 0, 0)),
        compiler_params=pltpu.CompilerParams(
            dimension_semantics=("parallel",), vmem_limit_bytes=vmem_limit),
    )(x_p)


def _finish_stats(pstats, count):
    """Chan-combine per-image (mean, M2) -> global (mean, 1/sqrt(var+eps))."""
    mean_i = pstats[:, :, 0]                              # [B, C]
    m2_i = pstats[:, :, 1]
    mean = jnp.mean(mean_i, axis=0)
    m2 = jnp.sum(m2_i, axis=0) + count * jnp.sum((mean_i - mean[None, :]) ** 2, axis=0)
    var = m2 / (pstats.shape[0] * count)
    return jnp.stack([mean, lax.rsqrt(var + BN_EPS)], axis=1)   # [C, 2]


def _col_masks(k, w_img, hw):
    """mask[dx+pad, 0, i] = 1.0 iff column(i)+dx stays inside the image row."""
    pad = k // 2
    col = np.arange(hw) % w_img
    m = np.zeros((k, 1, hw), np.float32)
    for dx in range(-pad, pad + 1):
        m[dx + pad, 0] = ((col + dx >= 0) & (col + dx < w_img)).astype(np.float32)
    return jnp.asarray(m)


def _stage1(x_p, seg, stats_x, masks, gb0, w0, b0, gbr, wr, *, k, w_img,
            mm_dtype, vmem_limit):
    B, cp_in, HW = x_p.shape
    L = seg.shape[1]
    cp_mid = w0.shape[0]
    has_res = gbr is not None

    in_specs = [
        pl.BlockSpec((1, cp_in, HW), lambda b: (b, 0, 0)),
        pl.BlockSpec((1, L, HW), lambda b: (b, 0, 0)),
        pl.BlockSpec((cp_in, 2), lambda b: (0, 0)),
        pl.BlockSpec((k, 1, HW), lambda b: (0, 0, 0)),
        pl.BlockSpec((2, cp_in, L), lambda b: (0, 0, 0)),
        pl.BlockSpec((cp_mid, k * k * cp_in), lambda b: (0, 0)),
        pl.BlockSpec((cp_mid, 1), lambda b: (0, 0)),
    ]
    args = [x_p, seg, stats_x, masks, gb0, w0, b0]
    out_shape = [jax.ShapeDtypeStruct((B, 1, HW), jnp.int32),
                 jax.ShapeDtypeStruct((B, cp_mid, HW), jnp.float32),
                 jax.ShapeDtypeStruct((B, cp_mid, 2), jnp.float32)]
    out_specs = [pl.BlockSpec((1, 1, HW), lambda b: (b, 0, 0)),
                 pl.BlockSpec((1, cp_mid, HW), lambda b: (b, 0, 0)),
                 pl.BlockSpec((1, cp_mid, 2), lambda b: (b, 0, 0))]
    if has_res:
        cp_out = wr.shape[0]
        in_specs += [pl.BlockSpec((2, cp_in, L), lambda b: (0, 0, 0)),
                     pl.BlockSpec((cp_out, cp_in), lambda b: (0, 0))]
        args += [gbr, wr]
        out_shape.append(jax.ShapeDtypeStruct((B, cp_out, HW), jnp.float32))
        out_specs.append(pl.BlockSpec((1, cp_out, HW), lambda b: (b, 0, 0)))

    return pl.pallas_call(
        _make_stage1_kernel(k, w_img, HW, has_res, mm_dtype),
        out_shape=tuple(out_shape),
        grid=(B,),
        in_specs=in_specs,
        out_specs=tuple(out_specs),
        compiler_params=pltpu.CompilerParams(
            dimension_semantics=("parallel",), vmem_limit_bytes=vmem_limit),
    )(*args)


def _stage2(d0, labels, stats_d0, masks, gb1, w1, b1, residual, *, k, w_img,
            mm_dtype, vmem_limit):
    B, cp_mid, HW = d0.shape
    cp_out = w1.shape[0]
    L = gb1.shape[2]
    return pl.pallas_call(
        _make_stage2_kernel(k, w_img, HW, mm_dtype),
        out_shape=jax.ShapeDtypeStruct((B, cp_out, HW), jnp.float32),
        grid=(B,),
        in_specs=[
            pl.BlockSpec((1, cp_mid, HW), lambda b: (b, 0, 0)),
            pl.BlockSpec((1, 1, HW), lambda b: (b, 0, 0)),
            pl.BlockSpec((cp_mid, 2), lambda b: (0, 0)),
            pl.BlockSpec((k, 1, HW), lambda b: (0, 0, 0)),
            pl.BlockSpec((2, cp_mid, L), lambda b: (0, 0, 0)),
            pl.BlockSpec((cp_out, k * k * cp_mid), lambda b: (0, 0)),
            pl.BlockSpec((cp_out, 1), lambda b: (0, 0)),
            pl.BlockSpec((1, cp_out, HW), lambda b: (b, 0, 0)),
        ],
        out_specs=pl.BlockSpec((1, cp_out, HW), lambda b: (b, 0, 0)),
        compiler_params=pltpu.CompilerParams(
            dimension_semantics=("parallel",), vmem_limit_bytes=vmem_limit),
    )(d0, labels, stats_d0, masks, gb1, w1, b1, residual)


# ------------------------------ param prep / forward --------------------------

def _nearest_resize_nchw(seg_nchw, H, W):
    """F.interpolate(..., mode='nearest') to (H, W)."""
    B, L, Hs, Ws = seg_nchw.shape
    if (Hs, Ws) == (H, W):
        return seg_nchw
    hi = (jnp.arange(H) * Hs // H).astype(jnp.int32)
    wi = (jnp.arange(W) * Ws // W).astype(jnp.int32)
    return seg_nchw[:, :, hi[:, None], wi[None, :]]


def prepare_params(raw):
    """Pad channel dims to multiples of 8 and reorder into the kernel layouts."""
    cin = raw['conv0_w'].shape[1]
    cmid = raw['conv0_w'].shape[0]
    cout = raw['conv1_w'].shape[0]
    k = raw['conv0_w'].shape[2]
    cp_in, cp_mid, cp_out = _ceil8(cin), _ceil8(cmid), _ceil8(cout)

    def conv_w_flat(w_oihw, cpo, cpi):
        o, i, kk, _ = w_oihw.shape
        w = jnp.zeros((cpo, cpi, kk, kk), jnp.float32)
        w = w.at[:o, :i].set(jnp.asarray(w_oihw, jnp.float32))
        # (o, ky, kx, i): column index = (ky*k + kx)*cpi + i, matching the tap stack
        return jnp.transpose(w, (0, 2, 3, 1)).reshape(cpo, kk * kk * cpi)

    def gb_tab(w_tab, b_tab, cp):
        n_lab, c = w_tab.shape
        g = jnp.zeros((cp, n_lab), jnp.float32).at[:c].set(jnp.asarray(w_tab, jnp.float32).T)
        b = jnp.zeros((cp, n_lab), jnp.float32).at[:c].set(jnp.asarray(b_tab, jnp.float32).T)
        return jnp.stack([g, b], axis=0)                  # [2, cp, L]

    def bias_col(b, cp):
        return jnp.zeros((cp, 1), jnp.float32).at[:b.shape[0], 0].set(
            jnp.asarray(b, jnp.float32))

    P = {'resnet_connection': raw['resnet_connection'], 'k': k,
         'cin': cin, 'cmid': cmid, 'cout': cout,
         'cp_in': cp_in, 'cp_mid': cp_mid, 'cp_out': cp_out,
         'w0': conv_w_flat(raw['conv0_w'], cp_mid, cp_in),
         'b0': bias_col(raw['conv0_b'], cp_mid),
         'w1': conv_w_flat(raw['conv1_w'], cp_out, cp_mid),
         'b1': bias_col(raw['conv1_b'], cp_out),
         'gb0': gb_tab(raw['mod0_w'], raw['mod0_b'], cp_in),
         'gb1': gb_tab(raw['mod1_w'], raw['mod1_b'], cp_mid)}
    if raw['resnet_connection']:
        P['w_res'] = conv_w_flat(raw['conv_res_w'], cp_out, cp_in)   # [cp_out, cp_in]
        P['gb_res'] = gb_tab(raw['mod_res_w'], raw['mod_res_b'], cp_in)
    return P


def clade_resblock_forward(x_nchw, seg_nchw, P, *, mm_dtype=jnp.float32):
    """CLADEResBlock forward. x: [B, Cin, H, W], seg: [B, L, Hs, Ws] (NCHW)."""
    B, cin, H, W = x_nchw.shape
    HW = H * W
    x = x_nchw.astype(jnp.float32).reshape(B, cin, HW)
    x_p = jnp.pad(x, ((0, 0), (0, P['cp_in'] - cin), (0, 0)))         # pad channels to 8n
    seg = _nearest_resize_nchw(seg_nchw, H, W).astype(jnp.float32)
    seg = seg.reshape(B, seg.shape[1], HW)
    masks = _col_masks(P['k'], W, HW)
    vmem_limit = _vmem_limit_bytes()

    # TODO(synk): eval-mode BatchNorm would use running_mean/var here; this uses
    # batch statistics (training-mode forward), matching the pure-JAX reference.
    stats_x = _finish_stats(_per_image_stats(x_p, vmem_limit), HW)

    if P['resnet_connection']:
        labels, d0, d0_pst, x_res = _stage1(
            x_p, seg, stats_x, masks, P['gb0'], P['w0'], P['b0'],
            P['gb_res'], P['w_res'], k=P['k'], w_img=W,
            mm_dtype=mm_dtype, vmem_limit=vmem_limit)
        residual = x_res
    else:
        labels, d0, d0_pst = _stage1(
            x_p, seg, stats_x, masks, P['gb0'], P['w0'], P['b0'], None, None,
            k=P['k'], w_img=W, mm_dtype=mm_dtype, vmem_limit=vmem_limit)
        residual = x_p                                                 # Cin == Cout here

    stats_d0 = _finish_stats(d0_pst, HW)
    out_p = _stage2(d0, labels, stats_d0, masks, P['gb1'], P['w1'], P['b1'],
                    residual, k=P['k'], w_img=W,
                    mm_dtype=mm_dtype, vmem_limit=vmem_limit)
    # TODO(synk): for large images add H-tiling with a pad-row halo for the 3x3
    # convs and fold the batch into the matmul N axis, keeping >=2 parallel grid
    # steps so both v7x TensorCores stay busy.
    return out_p[:, :P['cout'], :].reshape(B, P['cout'], H, W)


# ------------------------ pure-JAX reference (check) --------------------------

def _ref_mod(x, seg, w_tab, b_tab, n_leaky):
    mean = jnp.mean(x, axis=(0, 2, 3), keepdims=True)
    var = jnp.mean((x - mean) ** 2, axis=(0, 2, 3), keepdims=True)
    xn = (x - mean) / jnp.sqrt(var + BN_EPS)
    idx = jnp.argmax(seg, axis=1)                                     # [B, H, W]
    gamma = jnp.transpose(w_tab[idx], (0, 3, 1, 2))
    beta = jnp.transpose(b_tab[idx], (0, 3, 1, 2))
    out = gamma * xn + beta
    for _ in range(n_leaky):
        out = jnp.where(out > 0, out, LEAKY_SLOPE * out)
    return out


def _ref_conv(x, w_oihw, bias=None):
    out = lax.conv_general_dilated(
        x, w_oihw, window_strides=(1, 1), padding='SAME',
        dimension_numbers=('NCHW', 'OIHW', 'NCHW'))
    if bias is not None:
        out = out + bias.reshape(1, -1, 1, 1)
    return out


def ref_forward(x_nchw, seg_nchw, raw):
    B, Cin, H, W = x_nchw.shape
    x = x_nchw.astype(jnp.float32)
    seg = _nearest_resize_nchw(seg_nchw, H, W).astype(jnp.float32)
    if raw['resnet_connection']:
        xr = _ref_mod(x, seg, raw['mod_res_w'], raw['mod_res_b'], 0)
        x_res = _ref_conv(xr, raw['conv_res_w'])
    else:
        x_res = x
    a0 = _ref_mod(x, seg, raw['mod0_w'], raw['mod0_b'], 2)
    d0 = _ref_conv(a0, raw['conv0_w'], raw['conv0_b'])
    a1 = _ref_mod(d0, seg, raw['mod1_w'], raw['mod1_b'], 2)
    d1 = _ref_conv(a1, raw['conv1_w'], raw['conv1_b'])
    return x_res + d1


# --------------------------------- main ---------------------------------------

def _spectral_normalize(w):
    # spectral_norm: divide by the largest singular value of W reshaped [Cout, -1].
    # TODO(synk): PyTorch uses 1-step power iteration from a random u; we use the
    # exact sigma (its fixed point) since this is a synthetic deterministic init.
    wn = np.asarray(w, np.float32)
    sigma = np.linalg.svd(wn.reshape(wn.shape[0], -1), compute_uv=False)[0]
    return jnp.asarray(wn / sigma)


if __name__ == "__main__":
    input_dim, output_dim, num_labels, ksize = 4, 8, 5, 3
    middle_dim = min(input_dim, output_dim)
    B, H, W = 2, 16, 16

    key = jax.random.PRNGKey(0)
    ks = jax.random.split(key, 10)

    raw = {
        'resnet_connection': input_dim != output_dim,
        'conv0_w': _spectral_normalize(
            0.1 * jax.random.normal(ks[0], (middle_dim, input_dim, ksize, ksize))),
        'conv0_b': 0.1 * jax.random.normal(ks[1], (middle_dim,), jnp.float32),
        'conv1_w': _spectral_normalize(
            0.1 * jax.random.normal(ks[2], (output_dim, middle_dim, ksize, ksize))),
        'conv1_b': 0.1 * jax.random.normal(ks[3], (output_dim,), jnp.float32),
        'conv_res_w': _spectral_normalize(
            0.1 * jax.random.normal(ks[4], (output_dim, input_dim, 1, 1))),
        # ClassAffine: weight ~ U(0,1), bias = 0 (matches nn.init in __init__)
        'mod0_w': jax.random.uniform(ks[5], (num_labels, input_dim), jnp.float32),
        'mod0_b': jnp.zeros((num_labels, input_dim), jnp.float32),
        'mod1_w': jax.random.uniform(ks[6], (num_labels, middle_dim), jnp.float32),
        'mod1_b': jnp.zeros((num_labels, middle_dim), jnp.float32),
        'mod_res_w': jax.random.uniform(ks[7], (num_labels, input_dim), jnp.float32),
        'mod_res_b': jnp.zeros((num_labels, input_dim), jnp.float32),
    }
    P = prepare_params(raw)

    x = jax.random.normal(ks[8], (B, input_dim, H, W), jnp.float32)
    seg = jax.random.uniform(ks[9], (B, num_labels, H, W), jnp.float32)

    # f32 matmul-operand path (exact check).
    out = jax.block_until_ready(clade_resblock_forward(x, seg, P))
    assert out.shape == (B, output_dim, H, W), out.shape
    ref = jax.block_until_ready(ref_forward(x, seg, raw))
    np.testing.assert_allclose(np.asarray(out), np.asarray(ref),
                               rtol=1e-4, atol=1e-4)

    # bf16 matmul-operand fast path (v6e/v7x); elementwise math stays f32.
    out_bf16 = jax.block_until_ready(
        clade_resblock_forward(x, seg, P, mm_dtype=jnp.bfloat16))
    np.testing.assert_allclose(np.asarray(out_bf16), np.asarray(ref),
                               rtol=5e-2, atol=5e-2)

    print("KERNEL_OK")
</pallas_src>

<mosaic_0001>
module attributes {stable_mosaic.version = 11 : i64} {
  func.func @_stats_kernel(%arg0: i32, %arg1: memref<1x8x256xf32, #tpu.memory_space<vmem>>, %arg2: memref<1x8x2xf32, #tpu.memory_space<vmem>>) attributes {dimension_semantics = [#tpu.dimension_semantics<parallel>], iteration_bounds = array<i64: 2>, scalar_prefetch = 0 : i64, scratch_operands = 0 : i64, tpu.core_type = #tpu.core_type<tc>, window_params = [{transform_indices = @transform_0, window_bounds = array<i64: 1, 8, 256>}, {transform_indices = @transform_1, window_bounds = array<i64: 1, 8, 2>}]} {
    %c0 = arith.constant 0 : index
    %c0_0 = arith.constant 0 : index
    %c0_1 = arith.constant 0 : index
    %0 = vector.load %arg1[%c0, %c0_0, %c0_1] : memref<1x8x256xf32, #tpu.memory_space<vmem>>, vector<1x8x256xf32>
    %1 = vector.shape_cast %0 : vector<1x8x256xf32> to vector<8x256xf32>
    %cst = arith.constant dense<0.000000e+00> : vector<8xf32>
    %2 = vector.multi_reduction <add>, %1, %cst [1] : vector<8x256xf32> to vector<8xf32>
    %3 = vector.shape_cast %2 : vector<8xf32> to vector<8x1xf32>
    %cst_2 = arith.constant 2.560000e+02 : f32
    %4 = vector.broadcast %cst_2 : f32 to vector<8x1xf32>
    %5 = arith.divf %3, %4 : vector<8x1xf32>
    %6 = vector.broadcast %5 : vector<8x1xf32> to vector<8x256xf32>
    %7 = arith.subf %1, %6 : vector<8x256xf32>
    %8 = arith.mulf %7, %7 : vector<8x256xf32>
    %cst_3 = arith.constant dense<0.000000e+00> : vector<8xf32>
    %9 = vector.multi_reduction <add>, %8, %cst_3 [1] : vector<8x256xf32> to vector<8xf32>
    %10 = vector.shape_cast %9 : vector<8xf32> to vector<8x1xf32>
    %11 = tpu.concatenate %5, %10 in 1 : vector<8x1xf32>, vector<8x1xf32> -> vector<8x2xf32>
    %c0_4 = arith.constant 0 : index
    %c0_5 = arith.constant 0 : index
    %c0_6 = arith.constant 0 : index
    %12 = vector.load %arg2[%c0_4, %c0_5, %c0_6] : memref<1x8x2xf32, #tpu.memory_space<vmem>>, vector<1x8x2xf32>
    %13 = vector.shape_cast %12 : vector<1x8x2xf32> to vector<8x2xf32>
    %14 = vector.shape_cast %11 : vector<8x2xf32> to vector<1x8x2xf32>
    tpu.vector_store %arg2[%c0_4, %c0_5, %c0_6], %14 {strides = array<i32>} : memref<1x8x2xf32, #tpu.memory_space<vmem>>, vector<1x8x2xf32>,
    return
  }
  func.func @transform_0(%arg0: i32) -> (i32, i32, i32) {
    %c0_i32 = arith.constant 0 : i32
    %c0_i32_0 = arith.constant 0 : i32
    %c0_i32_1 = arith.constant 0 : i32
    return %arg0, %c0_i32, %c0_i32_0 : i32, i32, i32
  }
  func.func @transform_1(%arg0: i32) -> (i32, i32, i32) {
    %c0_i32 = arith.constant 0 : i32
    %c0_i32_0 = arith.constant 0 : i32
    %c0_i32_1 = arith.constant 0 : i32
    return %arg0, %c0_i32, %c0_i32_0 : i32, i32, i32
  }
}

</mosaic_0001>

<bundles_post_ra>
// kernel: tpu_custom_call.1
= control target key start
LH: loop header
LB: loop body
LE: loop exit
PB: predicated region body
PF: predicated region fallthrough
CT: control target
= control target key end

     0   :  { %6 = vsyncpa [#allocation3], 0  ;;  %s451_s0 = inlined_call_operand.hbm [shape: f32[2,8,256], index: 0, kind: input, shape index: {}]   ;;  %s452_s1 = inlined_call_operand.vmem [shape: f32[2,8,2], index: 1, kind: output, shape index: {}]  }
   0x1   :  { %8 = vsyncpa [#allocation3 + $0x1], 0  ;;  %s344_s6 = smov 0   ;;  %s346_s7 = smov 0  }
   0x2   :  { %s348_s8 = smov 0   ;;  %s350_s9 = smov 0  }
   0x3 LB: > { %s363_s10 = sadd.s32 4294967295, %s331_s9   ;;  %s366_s11 = sadd.s32 1, %s331_s9   ;;  %s331_s9 = sphi %s350_s9, %s460_s9   ;;  %s327_s8 = sphi %s348_s8, %s459_s8   ;;  %s323_s7 = sphi %s346_s7, %s458_s7   ;;  %s319_s6 = sphi %s344_s6, %s457_s6  }
   0x4   : > { %s18_s12 = ssub.s32 %s331_s9, %s366_s11  ;;  %s21_s13 = sadd.s32 1, %s327_s8 }
   0x5   : > { %p19_p0 = scmp.eq.s32.totalorder %s18_s12, 0  ;;  %p28_p1 = scmp.ne.s32.totalorder %s327_s8, %s323_s7 }
   0x6   : > { %p29_p2 = scmp.eq.s32.totalorder %s331_s9, 0  ;;  %p34_p3 = scmp.ne.s32.totalorder %s323_s7, %s319_s6 }
   0x7   : > { %s376_s14 = scalar_select %p19_p0, %s327_s8, %s21_s13  }
   0x8   : > { %p30_p4 = por %p29_p2, %p28_p1  ;;  %p35_p5 = scmp.eq.s32.totalorder %s363_s10, 0 }
   0x9   : > { %p234_p6 = scmp.lt.s32.totalorder %s331_s9, 2  ;;  %s84_s16 = sand.u32 1, %s327_s8  }
   0xa   : > { %p380_p7 = por %p35_p5, %p34_p3  ;;  %s219_s17 = sshll.u32 %s84_s16, 4 }
   0xb   : > { %s227_s18 = sshll.u32 %s331_s9, 8  ;;  %s88_s22 = scalar_lea.vmem [#allocation2], %s219_s17 }
   0xc   : > { %s389_s21 = scalar_lea.hbm %s451_s0, %s227_s18  ;;  %s96_s23 = sshll.u32 %s88_s22, 4  ;;  %s391_s23 = int_to_ptr.vmem [resolvable:$true] %s96_s23 }
   0xd   : > { %p393_p8 = pnand %p234_p6, %p30_p4  ;;  %s85_s25 = scalar_lea.sflag [#allocation3], %s84_s16 }
   0xe   : > { %s267_s26 = scalar_lea.hbm %s389_s21, 256  ;;  %s272_s29 = scalar_lea.hbm %s451_s0, 512 }
   0xf   : > { %p268_p11 = scmp.ne.s32.totalorder %s389_s21, %s267_s26  ;;  %p269_p12 = pneg %p393_p8 }
  0x10   : > { %p273_p1 = scmp.lt.u32.totalorder %s389_s21, %s451_s0  ;;  %p274_p2 = scmp.lt.u32.totalorder %s272_s29, %s267_s26 }
  0x11   : > { %p270_p13 = pnand %p269_p12, %p268_p11  ;;  %p276_p4 = scmp.lt.u32.totalorder %s267_s26, %s389_s21 }
  0x12   : > { %p275_p3 = por %p274_p2, %p273_p1 }
  0x13   : > { %p271_p0 = pneg %p270_p13 }
  0x14   : > { %p277_p5 = por %p276_p4, %p275_p3 }
  0x16   : > { %p278_p6 = pnand %p277_p5, %p271_p0 }
  0x18   : > { %281 = shalt.err (!%p278_p6)
}
  0x19   : > { %s282_s3 = scalar_lea.vmem %s391_s23, 256  ;;  %s333_s4 = smov [#allocation2]  }
  0x1a   : > { %p283_p11 = scmp.ne.s32.totalorder %s391_s23, %s282_s3  ;;  %s287_s5 = sshll.u32 %s333_s4, 4  ;;  %s288_s5 = int_to_ptr.vmem [resolvable:$false] %s287_s5 }
  0x1b   : > { %s289_s6 = scalar_lea.vmem %s288_s5, 512  ;;  %p290_p10 = scmp.lt.s32.totalorder %s391_s23, %s288_s5 }
  0x1c   : > { %p285_p13 = pnand %p283_p11, %p269_p12  ;;  %p291_p1 = scmp.lt.s32.totalorder %s289_s6, %s282_s3 }
  0x1e   : > { %p286_p9 = pneg %p285_p13  ;;  %p292_p2 = por %p291_p1, %p290_p10 }
  0x20   : > { %p293_p3 = pnand %p292_p2, %p286_p9 }
  0x22   : > { %296 = shalt.err (!%p293_p3)
}
  0x23   : > { %233 = dma.hbm_to_vmem [thread:$0]  (!%p393_p8), %s389_s21, 256, %s391_s23, %s85_s25  }
  0x24   : > { %p455_p0 = scmp.lt.s32.totalorder %s331_s9, 3  ;;  %p456_p4 = scmp.ge.s32.totalorder %s331_s9, 1 }
  0x26   : > { %p102_p12 = pnand %p456_p4, %p455_p0 }
  0x27   : > { %s107_s12 = sand.u32 (!%p102_p12), 1, %s323_s7  }
  0x28   : > { %105 = sbr.rel (%p102_p12) target bundleno = 345 (0x159), region = 24  ;;  %s223_s13 = sshll.u32 (!%p102_p12), %s107_s12, 4 }
  0x29   : > { %s108_s16 = scalar_lea.sflag (!%p102_p12), [#allocation3], %s107_s12  ;;  %s111_s17 = scalar_lea.vmem (!%p102_p12), [#allocation2], %s223_s13 }
  0x2f   : > { %314 = dma.done.wait (%p380_p7), %s108_s16, 256  }
  0x30   : > { %316 = vsyncadd (%p380_p7), %s108_s16, 4294967040  ;;  %v133_v0 = vld [vmem:[%s111_s17] sm:$0xff]  ;;  %v134_v1 = vld [vmem:[%s111_s17 + $0x8] sm:$0xff]  ;;  %p129_p8 = scmp.lt.s32.totalorder %s363_s10, 1  ;;  %vm147_vm0 = vcmask 7168   ;;  %vm149_vm1 = vcmask 15360  }
  0x31   : > { %v135_v2 = vadd.f32 %v134_v1, %v133_v0 }
  0x32   : > { %s462_s10 = smov (!%p129_p8, %s363_s10), 1 }
  0x33   : > { %136 = vadd.xlane.f32.xlu0 %v135_v2  ;;  %s224_s9 = sshll.u32 %s462_s10, 3 }
  0x34   : > { %s132_s19 = scalar_lea.vmem %s452_s1, %s224_s9 }
  0xc0   : > { %v137_v3 = vpop.xlane.xlu0 %136 }
  0xc1   : > { %v139_v4 = vmul.f32 0.00390625, %v137_v3 }
  0xc3   : > { %v140_v5 = vsub.f32 %v133_v0, %v139_v4  ;;  %v141_v6 = vsub.f32 %v134_v1, %v139_v4 }
  0xc5   : > { %v142_v7 = vmul.f32 %v140_v5, %v140_v5  ;;  %v143_v8 = vmul.f32 %v141_v6, %v141_v6 }
  0xc7   : > { %v144_v9 = vadd.f32 %v143_v8, %v142_v7 }
  0xc9   : > { %145 = vadd.xlane.f32.xlu0 %v144_v9 }
 0x156   : > { %v146_v10 = vpop.xlane.xlu0 %145 }
 0x157   : > { %v148_v11 = vsel %vm147_vm0, %v139_v4, %v146_v10 }
 0x158   : > { %150 = vst.msk [vmem:[%s132_s19] sm:$0xff] %vm149_vm1, %v148_v11 }
 0x159 PF: > { %p11_p7 = scmp.ge.s32.totalorder %s366_s11, 4   ;;  %s457_s6 = smov %s323_s7 }
 0x15a   : > { %s458_s7 = smov %s327_s8  ;;  %s459_s8 = smov %s376_s14 }
 0x15b   : > { %s460_s9 = smov %s366_s11  ;;  %13 = sbr.rel (!%p11_p7) target bundleno = 3 (0x3), region = 64 }
 0x162   :  { %170 = vsyncpa [#allocation3], 1 }
 0x163   :  { %172 = vsyncpa [#allocation3 + $0x1], 1 }

</bundles_post_ra>
